<compile_context>
chip_gen: v7x
topology: tpu7x:2x2x1
jax: 0.10.0
libtpu: 0.0.40
codegen_flags: <defaults>
</compile_context>

<pallas_src>
import jax
import jax.numpy as jnp
from jax.experimental import pallas as pl
from jax.experimental.pallas import tpu as pltpu


def mlp_kernel(x_ref, w1_ref, b1_ref, w2_ref, b2_ref, out_ref):
    # x_ref:  (TM, F)  f32 block of node features (cast to bf16 in-kernel)
    # w1_ref: (F, H)   bf16 full lin1 weight (transposed vs. PyTorch)
    # b1_ref: (1, H)   f32 lin1 bias
    # w2_ref: (H, C)   bf16 full lin2 weight (transposed vs. PyTorch)
    # b2_ref: (1, C)   f32 lin2 bias
    # out_ref:(TM, C)  f32 log_softmax over classes (dim=1)
    x = x_ref[...].astype(jnp.bfloat16)  # cast on the fly; no extra HBM pass

    # lin1 + ReLU (bf16 operands -> MXU single-pass, f32 accumulation)
    h = jnp.dot(x, w1_ref[...], preferred_element_type=jnp.float32)
    h = jnp.maximum(h + b1_ref[...], 0.0)

    # lin2 (bf16 operands again; f32 accumulation + f32 bias)
    logits = jnp.dot(h.astype(jnp.bfloat16), w2_ref[...],
                     preferred_element_type=jnp.float32) + b2_ref[...]

    # numerically-stable log_softmax along the class axis (PyTorch dim=1).
    # Rows belonging to the masked tail of the last block may hold garbage;
    # every op here is per-row independent and those writes are discarded.
    m = jnp.max(logits, axis=-1, keepdims=True)
    shifted = logits - m
    lse = jnp.log(jnp.sum(jnp.exp(shifted), axis=-1, keepdims=True))
    out_ref[...] = (shifted - lse).astype(out_ref.dtype)


def _round_up(v, m):
    return ((v + m - 1) // m) * m


def _choose_tile_rows(n):
    """Bytes-based row-tile heuristic.

    ~96 B/row of HBM traffic (64 B f32 x in + 32 B f32 out) and roughly
    ~600 B/row of peak VMEM (double-buffered blocks + kernel temporaries),
    so 32K rows/step ~= 3 MB of traffic and ~19 MB of VMEM — comfortably
    under the 32 MiB scoped limit on every generation while burying the
    ~0.35 us per-step overhead.  Keep the program count even and >= 2 so
    both v7x TensorCores share the work.
    """
    cap = 32768
    grid_m = max(2, 2 * pl.cdiv(n, 2 * cap))          # even #programs
    gran = 512 if n > 4096 else 16                    # 16 keeps tiny N sane
    tm = min(cap, _round_up(pl.cdiv(n, grid_m), gran))
    return max(tm, 16)


def mlp_forward(x, w1, b1, w2, b2, *, tm=None):
    """x: (N, F) float32. Returns (N, C) float32 log-probabilities."""
    x = jnp.asarray(x, jnp.float32)
    N, F = x.shape
    H = w1.shape[1]
    C = w2.shape[1]

    if tm is None:
        tm = _choose_tile_rows(N)
    assert tm % 16 == 0, "row tile must be a multiple of 16 (bf16 sublane pack)"

    # Ragged N: no host-side jnp.pad — Pallas masks the partial last block.
    grid_m = pl.cdiv(N, tm)

    # Tiny constant operands: one-off bf16 cast of the weights is negligible.
    w1_b = w1.astype(jnp.bfloat16)
    w2_b = w2.astype(jnp.bfloat16)
    b1_f = b1.reshape(1, H).astype(jnp.float32)
    b2_f = b2.reshape(1, C).astype(jnp.float32)

    cost = pl.CostEstimate(
        flops=2 * N * (F * H + H * C),
        transcendentals=N * (C + 1),
        bytes_accessed=N * (F * 4 + C * 4) + (F * H + H * C) * 2 + (H + C) * 4,
    )

    out = pl.pallas_call(
        mlp_kernel,
        out_shape=jax.ShapeDtypeStruct((N, C), jnp.float32),
        grid=(grid_m,),
        in_specs=[
            pl.BlockSpec((tm, F), lambda i: (i, 0)),   # x tile (f32, cast in-kernel)
            pl.BlockSpec((F, H), lambda i: (0, 0)),    # W1 (full, bf16)
            pl.BlockSpec((1, H), lambda i: (0, 0)),    # b1 (f32)
            pl.BlockSpec((H, C), lambda i: (0, 0)),    # W2 (full, bf16)
            pl.BlockSpec((1, C), lambda i: (0, 0)),    # b2 (f32)
        ],
        out_specs=pl.BlockSpec((tm, C), lambda i: (i, 0)),
        compiler_params=pltpu.CompilerParams(
            dimension_semantics=("parallel",),
            vmem_limit_bytes=32 * 1024 * 1024,
        ),
        cost_estimate=cost,
    )(x, w1_b, b1_f, w2_b, b2_f)

    return out


def init_linear_params(key, fan_in, fan_out):
    """Deterministic init mimicking torch.nn.Linear defaults:
    weight ~ U(-1/sqrt(fan_in), 1/sqrt(fan_in)), same for bias.
    Returned weight is (fan_in, fan_out) i.e. already transposed for x @ W."""
    k_w, k_b = jax.random.split(key)
    bound = 1.0 / jnp.sqrt(jnp.asarray(fan_in, jnp.float32))
    w = jax.random.uniform(k_w, (fan_in, fan_out), jnp.float32, -bound, bound)
    b = jax.random.uniform(k_b, (1, fan_out), jnp.float32, -bound, bound)
    return w, b


def mlp_reference_f32(x, w1, b1, w2, b2):
    h = jnp.maximum(x @ w1 + b1, 0.0)
    logits = h @ w2 + b2
    return jax.nn.log_softmax(logits, axis=1)


def mlp_reference_bf16(x, w1, b1, w2, b2):
    """Reference matching the kernel's bf16 operand path."""
    xb = x.astype(jnp.bfloat16)
    w1b = w1.astype(jnp.bfloat16)
    w2b = w2.astype(jnp.bfloat16)
    h = jnp.maximum(
        jnp.dot(xb, w1b, preferred_element_type=jnp.float32) + b1, 0.0)
    logits = jnp.dot(h.astype(jnp.bfloat16), w2b,
                     preferred_element_type=jnp.float32) + b2
    return jax.nn.log_softmax(logits, axis=1)


if __name__ == "__main__":
    # Small synthetic "dataset": N nodes, num_node_features=16,
    # args.hidden=32, num_classes=8. (edge_index is unused by MLP.forward.)
    N, NUM_FEATURES, HIDDEN, NUM_CLASSES = 256, 16, 32, 8

    key = jax.random.PRNGKey(0)
    k_x, k_l1, k_l2, k_x2 = jax.random.split(key, 4)

    x = jax.random.normal(k_x, (N, NUM_FEATURES), jnp.float32)
    w1, b1 = init_linear_params(k_l1, NUM_FEATURES, HIDDEN)
    w2, b2 = init_linear_params(k_l2, HIDDEN, NUM_CLASSES)

    out = mlp_forward(x, w1, b1, w2, b2)
    out = jax.block_until_ready(out)
    assert out.shape == (N, NUM_CLASSES)

    # Tight check vs a reference using the same bf16 operand path.
    ref_bf16 = mlp_reference_bf16(x, w1, b1, w2, b2)
    assert jnp.allclose(out, ref_bf16, atol=2e-3, rtol=2e-3), \
        "mismatch vs bf16-matched reference"

    # Loose check vs the pure f32 reference (bf16 streaming costs ~1e-2 abs).
    ref_f32 = mlp_reference_f32(x, w1, b1, w2, b2)
    assert jnp.allclose(out, ref_f32, atol=5e-2, rtol=5e-2), \
        "mismatch vs f32 reference"

    # log-softmax sanity: rows must exponentiate-sum to 1.
    row_sums = jnp.sum(jnp.exp(out), axis=1)
    assert jnp.allclose(row_sums, 1.0, atol=1e-3), "log_softmax rows not normalized"

    # Ragged-N path (no host-side padding; partial last block is masked).
    N2 = 200
    x2 = jax.random.normal(k_x2, (N2, NUM_FEATURES), jnp.float32)
    out2 = jax.block_until_ready(mlp_forward(x2, w1, b1, w2, b2))
    assert out2.shape == (N2, NUM_CLASSES)
    ref2 = mlp_reference_bf16(x2, w1, b1, w2, b2)
    assert jnp.allclose(out2, ref2, atol=2e-3, rtol=2e-3), \
        "ragged-N mismatch vs bf16-matched reference"

    print("KERNEL_OK")
</pallas_src>

<mosaic_0001>
module attributes {stable_mosaic.version = 11 : i64} {
  func.func @mlp_kernel(%arg0: i32, %arg1: memref<128x16xf32, #tpu.memory_space<vmem>>, %arg2: memref<16x32xbf16, #tpu.memory_space<vmem>>, %arg3: memref<1x32xf32, #tpu.memory_space<vmem>>, %arg4: memref<32x8xbf16, #tpu.memory_space<vmem>>, %arg5: memref<1x8xf32, #tpu.memory_space<vmem>>, %arg6: memref<128x8xf32, #tpu.memory_space<vmem>>) attributes {dimension_semantics = [#tpu.dimension_semantics<parallel>], iteration_bounds = array<i64: 2>, scalar_prefetch = 0 : i64, scratch_operands = 0 : i64, tpu.core_type = #tpu.core_type<tc>, window_params = [{transform_indices = @transform_0, window_bounds = array<i64: 128, 16>}, {pipeline_mode = #tpu.pipeline_mode<synchronous>, transform_indices = @transform_1, window_bounds = array<i64: 16, 32>}, {pipeline_mode = #tpu.pipeline_mode<synchronous>, transform_indices = @transform_2, window_bounds = array<i64: 1, 32>}, {pipeline_mode = #tpu.pipeline_mode<synchronous>, transform_indices = @transform_3, window_bounds = array<i64: 32, 8>}, {pipeline_mode = #tpu.pipeline_mode<synchronous>, transform_indices = @transform_4, window_bounds = array<i64: 1, 8>}, {transform_indices = @transform_5, window_bounds = array<i64: 128, 8>}]} {
    %c0 = arith.constant 0 : index
    %c0_0 = arith.constant 0 : index
    %0 = vector.load %arg1[%c0, %c0_0] : memref<128x16xf32, #tpu.memory_space<vmem>>, vector<128x16xf32>
    %1 = arith.truncf %0 : vector<128x16xf32> to vector<128x16xbf16>
    %c0_1 = arith.constant 0 : index
    %c0_2 = arith.constant 0 : index
    %2 = vector.load %arg2[%c0_1, %c0_2] : memref<16x32xbf16, #tpu.memory_space<vmem>>, vector<16x32xbf16>
    %cst = arith.constant dense<0.000000e+00> : vector<128x32xf32>
    %3 = tpu.matmul %1, %2, %cst {dimension_numbers = #tpu.dot_dimension_numbers<[1], [0], [0], [1], [0, 0, 1, 1], [], []>} : vector<128x16xbf16>, vector<16x32xbf16>, vector<128x32xf32> -> vector<128x32xf32>
    %c0_3 = arith.constant 0 : index
    %c0_4 = arith.constant 0 : index
    %4 = vector.load %arg3[%c0_3, %c0_4] : memref<1x32xf32, #tpu.memory_space<vmem>>, vector<1x32xf32>
    %5 = vector.broadcast %4 : vector<1x32xf32> to vector<128x32xf32>
    %6 = arith.addf %3, %5 : vector<128x32xf32>
    %cst_5 = arith.constant 0.000000e+00 : f32
    %7 = vector.broadcast %cst_5 : f32 to vector<128x32xf32>
    %8 = arith.maximumf %6, %7 : vector<128x32xf32>
    %9 = arith.truncf %8 : vector<128x32xf32> to vector<128x32xbf16>
    %c0_6 = arith.constant 0 : index
    %c0_7 = arith.constant 0 : index
    %10 = vector.load %arg4[%c0_6, %c0_7] : memref<32x8xbf16, #tpu.memory_space<vmem>>, vector<32x8xbf16>
    %cst_8 = arith.constant dense<0.000000e+00> : vector<128x8xf32>
    %11 = tpu.matmul %9, %10, %cst_8 {dimension_numbers = #tpu.dot_dimension_numbers<[1], [0], [0], [1], [0, 0, 1, 1], [], []>} : vector<128x32xbf16>, vector<32x8xbf16>, vector<128x8xf32> -> vector<128x8xf32>
    %c0_9 = arith.constant 0 : index
    %c0_10 = arith.constant 0 : index
    %12 = vector.load %arg5[%c0_9, %c0_10] : memref<1x8xf32, #tpu.memory_space<vmem>>, vector<1x8xf32>
    %13 = vector.broadcast %12 : vector<1x8xf32> to vector<128x8xf32>
    %14 = arith.addf %11, %13 : vector<128x8xf32>
    %cst_11 = arith.constant dense<0xFF800000> : vector<128xf32>
    %15 = vector.multi_reduction <maximumf>, %14, %cst_11 [1] : vector<128x8xf32> to vector<128xf32>
    %16 = vector.shape_cast %15 : vector<128xf32> to vector<128x1xf32>
    %17 = vector.broadcast %16 : vector<128x1xf32> to vector<128x8xf32>
    %18 = arith.subf %14, %17 : vector<128x8xf32>
    %19 = math.exp %18 : vector<128x8xf32>
    %cst_12 = arith.constant dense<0.000000e+00> : vector<128xf32>
    %20 = vector.multi_reduction <add>, %19, %cst_12 [1] : vector<128x8xf32> to vector<128xf32>
    %21 = vector.shape_cast %20 : vector<128xf32> to vector<128x1xf32>
    %22 = math.log %21 : vector<128x1xf32>
    %23 = vector.broadcast %22 : vector<128x1xf32> to vector<128x8xf32>
    %24 = arith.subf %18, %23 : vector<128x8xf32>
    %c0_13 = arith.constant 0 : index
    %c0_14 = arith.constant 0 : index
    %25 = vector.load %arg6[%c0_13, %c0_14] : memref<128x8xf32, #tpu.memory_space<vmem>>, vector<128x8xf32>
    tpu.vector_store %arg6[%c0_13, %c0_14], %24 {strides = array<i32>} : memref<128x8xf32, #tpu.memory_space<vmem>>, vector<128x8xf32>,
    return
  }
  func.func @transform_0(%arg0: i32) -> (i32, i32) {
    %c0_i32 = arith.constant 0 : i32
    %c0_i32_0 = arith.constant 0 : i32
    return %arg0, %c0_i32 : i32, i32
  }
  func.func @transform_1(%arg0: i32) -> (i32, i32) {
    %c0_i32 = arith.constant 0 : i32
    %c0_i32_0 = arith.constant 0 : i32
    %c0_i32_1 = arith.constant 0 : i32
    return %c0_i32, %c0_i32_0 : i32, i32
  }
  func.func @transform_2(%arg0: i32) -> (i32, i32) {
    %c0_i32 = arith.constant 0 : i32
    %c0_i32_0 = arith.constant 0 : i32
    %c0_i32_1 = arith.constant 0 : i32
    return %c0_i32, %c0_i32_0 : i32, i32
  }
  func.func @transform_3(%arg0: i32) -> (i32, i32) {
    %c0_i32 = arith.constant 0 : i32
    %c0_i32_0 = arith.constant 0 : i32
    %c0_i32_1 = arith.constant 0 : i32
    return %c0_i32, %c0_i32_0 : i32, i32
  }
  func.func @transform_4(%arg0: i32) -> (i32, i32) {
    %c0_i32 = arith.constant 0 : i32
    %c0_i32_0 = arith.constant 0 : i32
    %c0_i32_1 = arith.constant 0 : i32
    return %c0_i32, %c0_i32_0 : i32, i32
  }
  func.func @transform_5(%arg0: i32) -> (i32, i32) {
    %c0_i32 = arith.constant 0 : i32
    %c0_i32_0 = arith.constant 0 : i32
    return %arg0, %c0_i32 : i32, i32
  }
}

</mosaic_0001>

<bundles_post_ra>
// kernel: tpu_custom_call.1
= control target key start
LH: loop header
LB: loop body
LE: loop exit
PB: predicated region body
PF: predicated region fallthrough
CT: control target
= control target key end

     0   :  { %s1026_s18 = smov 0   ;;  %s1293_s0 = inlined_call_operand.vmem [shape: f32[256,16], index: 0, kind: input, shape index: {}]   ;;  %s1294_s1 = inlined_call_operand.vmem [shape: bf16[16,32], index: 1, kind: input, shape index: {}]   ;;  %s1295_s2 = inlined_call_operand.vmem [shape: f32[1,32], index: 2, kind: input, shape index: {}]   ;;  %s1296_s3 = inlined_call_operand.vmem [shape: bf16[32,8], index: 3, kind: input, shape index: {}]   ;;  %s1297_s4 = inlined_call_operand.vmem [shape: f32[1,8], index: 4, kind: input, shape index: {}]   ;;  %s1298_s5 = inlined_call_operand.vmem [shape: f32[256,8], index: 5, kind: output, shape index: {}]  }
   0x1 LB: > { %s824_s19 = sadd.s32 4294967295, %s994_s18   ;;  %p828_p0 = scmp.ge.s32.totalorder %s994_s18, 1  ;;  %s994_s18 = sphi %s1026_s18, %s15_s18  }
   0x2   : > { %p188_p1 = scmp.lt.s32.totalorder %s994_s18, 3 }
   0x4   : > { %p189_p2 = pnand %p828_p0, %p188_p1 }
   0x5   : > { %v921_v0 = vld [vmem:[%s1294_s1] sm:$0xff] (!%p189_p2)   ;;  %s829_s22 = sshll.u32 (!%p189_p2), %s824_s19, 4  ;;  %vm268_vm0 = vcmask (!%p189_p2), 130048   ;;  %v923_v26 = vld [vmem:[%s1296_s3 + $0x8] sm:$0xff] (!%p189_p2)   ;;  %vm437_vm1 = vcmask (!%p189_p2), 261120   ;;  %vm559_vm2 = vcmask (!%p189_p2), 64512  }
   0x6   : > { %192 = sbr.rel (%p189_p2) target bundleno = 805 (0x325), region = 40  ;;  %p217_p3 = scmp.lt.s32.totalorder (!%p189_p2), %s829_s22, 31  ;;  %875 = vmatprep.subr.bf16.mxu0 (!%p189_p2), %v921_v0  ;;  %v922_v25 = vld [vmem:[%s1296_s3] sm:$0xff] (!%p189_p2)  }
   0x7   : > { %876 = vmatpush3.bf16.msra.mxu0 (!%p189_p2), %v921_v0  ;;  %893 = vmatprep.subr.bf16.mxu1 (!%p189_p2), %v922_v25  ;;  %v833_v27 = vld [vmem:[%s1295_s2] ss:$0 sm:$0xff] (!%p189_p2) }
   0x8   : > { %894 = vmatpush3.bf16.msra.mxu1 (!%p189_p2), %v922_v25 }
   0x9   : > { %895 = vmatprep.subr.bf16.mxu1 (!%p189_p2), %v923_v26 }
   0xc   : > { %896 = vmatpush3.bf16.msra.mxu1 (!%p189_p2), %v923_v26 }
   0xd   : > { %s1300_s22 = smov (!%p217_p3, %s829_s22), 31 }
   0xe   : > { %s830_s23 = sshll.u32 %s1300_s22, 3 }
   0xf   : > { %s1045_s26 = scalar_lea.vmem %s1293_s0, %s830_s23  ;;  %s1240_s12 = scalar_lea.vmem %s1298_s5, %s830_s23 }
  0x10   : > { %v229_v1 = vld [vmem:[%s1045_s26] sm:$0xff]  ;;  %v230_v2 = vld [vmem:[%s1045_s26 + $0x8] sm:$0xff]  ;;  %v231_v3 = vld [vmem:[%s1045_s26 + $0x10] sm:$0xff] }
  0x11   : > { %v245_v4 = vpack.c.bf16 %v230_v2, %v229_v1  ;;  %v232_v5 = vld [vmem:[%s1045_s26 + $0x18] sm:$0xff]  ;;  %v233_v6 = vld [vmem:[%s1045_s26 + $0x20] sm:$0xff]  ;;  %v234_v7 = vld [vmem:[%s1045_s26 + $0x28] sm:$0xff] }
  0x12   : > { %v246_v8 = vpack.c.bf16 %v232_v5, %v231_v3  ;;  %v247_v9 = vpack.c.bf16 %v234_v7, %v233_v6  ;;  %v235_v10 = vld [vmem:[%s1045_s26 + $0x30] sm:$0xff]  ;;  %v236_v11 = vld [vmem:[%s1045_s26 + $0x38] sm:$0xff]  ;;  %v237_v12 = vld [vmem:[%s1045_s26 + $0x40] sm:$0xff] }
  0x13   : > { %877 = vmatprep.mubr.msk.bf16.mxu0 %vm268_vm0, %v245_v4  ;;  %v238_v13 = vld [vmem:[%s1045_s26 + $0x48] sm:$0xff]  ;;  %v248_v14 = vpack.c.bf16 %v236_v11, %v235_v10  ;;  %v239_v16 = vld [vmem:[%s1045_s26 + $0x50] sm:$0xff]  ;;  %v240_v17 = vld [vmem:[%s1045_s26 + $0x58] sm:$0xff] }
  0x14   : > { %878 = vmatmul.mubr.msk.bf16.vlgmr.msra.gmra.mrb[0].mxu0 %vm268_vm0, %v246_v8  ;;  %v249_v15 = vpack.c.bf16 %v238_v13, %v237_v12  ;;  %v241_v18 = vld [vmem:[%s1045_s26 + $0x60] sm:$0xff]  ;;  %v242_v19 = vld [vmem:[%s1045_s26 + $0x68] sm:$0xff]  ;;  %v250_v20 = vpack.c.bf16 %v240_v17, %v239_v16  ;;  %v243_v22 = vld [vmem:[%s1045_s26 + $0x70] sm:$0xff] }
  0x15   : > { %881 = vmatprep.mubr.msk.bf16.mxu0 %vm268_vm0, %v247_v9  ;;  %v251_v21 = vpack.c.bf16 %v242_v19, %v241_v18  ;;  %v244_v23 = vld [vmem:[%s1045_s26 + $0x78] sm:$0xff] }
  0x16   : > { %v252_v24 = vpack.c.bf16 %v244_v23, %v243_v22 }
  0x1c   : > { %882 = vmatmul.mubr.msk.bf16.gmra.mrb[4].mxu0 %vm268_vm0, %v248_v14 }
  0x1d   : > { %885 = vmatprep.mubr.msk.bf16.mxu0 %vm268_vm0, %v249_v15 }
  0x24   : > { %886 = vmatmul.mubr.msk.bf16.gmra.mrb[8].mxu0 %vm268_vm0, %v250_v20  ;;  %v843_v20 = vld [vmem:[%s1297_s4] ss:$0 sm:$0xff] }
  0x25   : > { %889 = vmatprep.mubr.msk.bf16.mxu0 %vm268_vm0, %v251_v21 }
  0x2c   : > { %890 = vmatmul.mubr.msk.bf16.gmra.mrb[12].mxu0 %vm268_vm0, %v252_v24 }
  0xe7   : > { %v879_v28 = vpop.f32.mrb[0].mxu0 }
  0xe8   : > { %v336_v29 = vadd.f32 %v879_v28, %v833_v27  ;;  %v327_v30 = vpop.f32.mrb[1].mxu0 }
  0xe9   : > { %v328_v31 = vadd.f32 %v833_v27, %v327_v30  ;;  %v880_v32 = vpop.f32.mrb[2].mxu0 }
  0xea   : > { %v339_v33 = vadd.f32 %v880_v32, %v833_v27  ;;  %v330_v34 = vpop.f32.mrb[3].mxu0  ;;  %v392_v36 = vmax.f32 %v336_v29, 0.0 }
  0xeb   : > { %v331_v35 = vadd.f32 %v833_v27, %v330_v34  ;;  %v390_v38 = vmax.f32 %v328_v31, 0.0 }
  0xec   : > { %v393_v37 = vmax.f32 %v339_v33, 0.0 }
  0xed   : > { %v391_v39 = vmax.f32 %v331_v35, 0.0 }
  0xee   : > { %v407_v40 = vpack.c.bf16 %v393_v37, %v392_v36 }
  0xef   : > { %v883_v41 = vpop.f32.mrb[4].mxu0  ;;  %v406_v42 = vpack.c.bf16 %v391_v39, %v390_v38 }
  0xf0   : > { %v352_v43 = vadd.f32 %v883_v41, %v833_v27  ;;  %v343_v44 = vpop.f32.mrb[5].mxu0 }
  0xf1   : > { %v344_v45 = vadd.f32 %v833_v27, %v343_v44  ;;  %v884_v46 = vpop.f32.mrb[6].mxu0  ;;  %897 = vmatprep.mubr.msk.bf16.mxu1 %vm437_vm1, %v406_v42 }
  0xf2   : > { %v396_v47 = vmax.f32 %v352_v43, 0.0  ;;  %v355_v48 = vadd.f32 %v884_v46, %v833_v27  ;;  %v346_v49 = vpop.f32.mrb[7].mxu0  ;;  %898 = vmatmul.mubr.msk.bf16.vlgmr.msra.gmra.mrb[0].mxu1 %vm437_vm1, %v407_v40 }
  0xf3   : > { %v347_v50 = vadd.f32 %v833_v27, %v346_v49  ;;  %v394_v52 = vmax.f32 %v344_v45, 0.0 }
  0xf4   : > { %v397_v51 = vmax.f32 %v355_v48, 0.0 }
  0xf5   : > { %v395_v53 = vmax.f32 %v347_v50, 0.0 }
  0xf6   : > { %v409_v54 = vpack.c.bf16 %v397_v51, %v396_v47 }
  0xf7   : > { %v408_v55 = vpack.c.bf16 %v395_v53, %v394_v52  ;;  %v887_v56 = vpop.f32.mrb[8].mxu0 }
  0xf8   : > { %v368_v57 = vadd.f32 %v887_v56, %v833_v27  ;;  %v359_v58 = vpop.f32.mrb[9].mxu0 }
  0xf9   : > { %v360_v59 = vadd.f32 %v833_v27, %v359_v58  ;;  %v888_v60 = vpop.f32.mrb[10].mxu0  ;;  %901 = vmatprep.mubr.msk.bf16.mxu1 %vm437_vm1, %v408_v55 }
  0xfa   : > { %v400_v61 = vmax.f32 %v368_v57, 0.0  ;;  %v371_v62 = vadd.f32 %v888_v60, %v833_v27  ;;  %v362_v63 = vpop.f32.mrb[11].mxu0  ;;  %902 = vmatmul.mubr.msk.bf16.gmra.mrb[4].mxu1 %vm437_vm1, %v409_v54 }
  0xfb   : > { %v363_v0 = vadd.f32 %v833_v27, %v362_v63  ;;  %v398_v2 = vmax.f32 %v360_v59, 0.0 }
  0xfc   : > { %v401_v1 = vmax.f32 %v371_v62, 0.0 }
  0xfd   : > { %v399_v3 = vmax.f32 %v363_v0, 0.0 }
  0xfe   : > { %v411_v4 = vpack.c.bf16 %v401_v1, %v400_v61 }
  0xff   : > { %v410_v5 = vpack.c.bf16 %v399_v3, %v398_v2  ;;  %v891_v6 = vpop.f32.mrb[12].mxu0 }
 0x100   : > { %v384_v7 = vadd.f32 %v891_v6, %v833_v27  ;;  %v375_v8 = vpop.f32.mrb[13].mxu0 }
 0x101   : > { %v376_v9 = vadd.f32 %v833_v27, %v375_v8  ;;  %v892_v10 = vpop.f32.mrb[14].mxu0  ;;  %905 = vmatprep.mubr.msk.bf16.mxu1 %vm437_vm1, %v410_v5 }
 0x102   : > { %v404_v11 = vmax.f32 %v384_v7, 0.0  ;;  %v387_v12 = vadd.f32 %v892_v10, %v833_v27  ;;  %v378_v13 = vpop.f32.mrb[15].mxu0  ;;  %906 = vmatmul.mubr.msk.bf16.gmra.mrb[8].mxu1 %vm437_vm1, %v411_v4 }
 0x103   : > { %v379_v14 = vadd.f32 %v833_v27, %v378_v13  ;;  %v402_v16 = vmax.f32 %v376_v9, 0.0 }
 0x104   : > { %v405_v15 = vmax.f32 %v387_v12, 0.0 }
 0x105   : > { %v403_v17 = vmax.f32 %v379_v14, 0.0 }
 0x106   : > { %v413_v18 = vpack.c.bf16 %v405_v15, %v404_v11 }
 0x107   : > { %v412_v19 = vpack.c.bf16 %v403_v17, %v402_v16 }
 0x109   : > { %909 = vmatprep.mubr.msk.bf16.mxu1 %vm437_vm1, %v412_v19 }
 0x10a   : > { %910 = vmatmul.mubr.msk.bf16.gmra.mrb[12].mxu1 %vm437_vm1, %v413_v18 }
 0x1c5   : > { %v899_v21 = vpop.f32.mrb[0].mxu1 }
 0x1c6   : > { %v1091_v22 = vadd.f32 %v899_v21, %v843_v20  ;;  %v496_v23 = vpop.f32.mrb[1].mxu1 }
 0x1c7   : > { %v1093_v24 = vadd.f32 %v843_v20, %v496_v23  ;;  %v900_v25 = vpop.f32.mrb[2].mxu1 }
 0x1c8   : > { %v1095_v26 = vadd.f32 %v900_v25, %v843_v20  ;;  %v499_v27 = vpop.f32.mrb[3].mxu1  ;;  %v566_v28 = vsel %vm559_vm2, %v1091_v22, -inf }
 0x1c9   : > { %v1099_v29 = vadd.f32 %v843_v20, %v499_v27  ;;  %567 = vmax.xlane.f32.xlu1 %v566_v28  ;;  %v560_v30 = vsel %vm559_vm2, %v1093_v24, -inf }
 0x1ca   : > { %561 = vmax.xlane.f32.xlu0 %v560_v30  ;;  %v569_v31 = vsel %vm559_vm2, %v1095_v26, -inf }
 0x1cb   : > { %v563_v33 = vsel %vm559_vm2, %v1099_v29, -inf }
 0x1cd   : > { %570 = vmax.xlane.f32.xlu1 %v569_v31  ;;  %v903_v32 = vpop.f32.mrb[4].mxu1 }
 0x1ce   : > { %v1107_v34 = vadd.f32 %v903_v32, %v843_v20  ;;  %v512_v35 = vpop.f32.mrb[5].mxu1  ;;  %564 = vmax.xlane.f32.xlu0 %v563_v33 }
 0x1cf   : > { %v904_v36 = vpop.f32.mrb[6].mxu1  ;;  %v1113_v40 = vadd.f32 %v843_v20, %v512_v35 }
 0x1d0   : > { %v1109_v37 = vadd.f32 %v904_v36, %v843_v20  ;;  %v515_v38 = vpop.f32.mrb[7].mxu1  ;;  %v578_v39 = vsel %vm559_vm2, %v1107_v34, -inf }
 0x1d1   : > { %v1115_v41 = vadd.f32 %v843_v20, %v515_v38  ;;  %v572_v44 = vsel %vm559_vm2, %v1113_v40, -inf }
 0x1d2   : > { %579 = vmax.xlane.f32.xlu0 %v578_v39  ;;  %v581_v42 = vsel %vm559_vm2, %v1109_v37, -inf }
 0x1d3   : > { %582 = vmax.xlane.f32.xlu1 %v581_v42  ;;  %v575_v47 = vsel %vm559_vm2, %v1115_v41, -inf }
 0x1d5   : > { %v907_v43 = vpop.f32.mrb[8].mxu1 }
 0x1d6   : > { %v1121_v45 = vadd.f32 %v907_v43, %v843_v20  ;;  %v528_v46 = vpop.f32.mrb[9].mxu1  ;;  %573 = vmax.xlane.f32.xlu0 %v572_v44 }
 0x1d7   : > { %v908_v48 = vpop.f32.mrb[10].mxu1  ;;  %576 = vmax.xlane.f32.xlu1 %v575_v47  ;;  %v1129_v52 = vadd.f32 %v843_v20, %v528_v46 }
 0x1d8   : > { %v1125_v49 = vadd.f32 %v908_v48, %v843_v20  ;;  %v531_v50 = vpop.f32.mrb[11].mxu1  ;;  %v590_v51 = vsel %vm559_vm2, %v1121_v45, -inf }
 0x1d9   : > { %v1131_v53 = vadd.f32 %v843_v20, %v531_v50  ;;  %v584_v56 = vsel %vm559_vm2, %v1129_v52, -inf }
 0x1da   : > { %591 = vmax.xlane.f32.xlu0 %v590_v51  ;;  %v593_v54 = vsel %vm559_vm2, %v1125_v49, -inf }
 0x1db   : > { %594 = vmax.xlane.f32.xlu1 %v593_v54  ;;  %v587_v58 = vsel %vm559_vm2, %v1131_v53, -inf }
 0x1dd   : > { %v911_v55 = vpop.f32.mrb[12].mxu1 }
 0x1de   : > { %v544_v57 = vpop.f32.mrb[13].mxu1  ;;  %585 = vmax.xlane.f32.xlu0 %v584_v56  ;;  %v1141_v62 = vadd.f32 %v911_v55, %v843_v20 }
 0x1df   : > { %v1139_v59 = vadd.f32 %v843_v20, %v544_v57  ;;  %v912_v60 = vpop.f32.mrb[14].mxu1  ;;  %588 = vmax.xlane.f32.xlu1 %v587_v58 }
 0x1e0   : > { %v547_v61 = vpop.f32.mrb[15].mxu1  ;;  %v1147_v1 = vadd.f32 %v912_v60, %v843_v20  ;;  %v602_v3 = vsel %vm559_vm2, %v1141_v62, -inf }
 0x1e1   : > { %v1143_v63 = vadd.f32 %v843_v20, %v547_v61  ;;  %v596_v0 = vsel %vm559_vm2, %v1139_v59, -inf }
 0x1e2   : > { %597 = vmax.xlane.f32.xlu0 %v596_v0  ;;  %v605_v4 = vsel %vm559_vm2, %v1147_v1, -inf }
 0x1e3   : > { %v599_v2 = vsel %vm559_vm2, %v1143_v63, -inf }
 0x1e4   : > { %600 = vmax.xlane.f32.xlu1 %v599_v2 }
 0x1e6   : > { %603 = vmax.xlane.f32.xlu0 %v602_v3 }
 0x1e8   : > { %606 = vmax.xlane.f32.xlu1 %v605_v4 }
 0x256   : > { %v568_v5 = vpop.xlane.xlu1 %567 }
 0x257   : > { %v1156_v6 = vsub.f32 %v1091_v22, %v568_v5  ;;  %v562_v7 = vpop.xlane.xlu0 %561 }
 0x258   : > { %v1159_v8 = vsub.f32 %v1093_v24, %v562_v7 }
 0x259   : > { %v628_v9 = vmul.f32 1.442695, %v1156_v6 }
 0x25a   : > { %v624_v10 = vmul.f32 1.442695, %v1159_v8  ;;  %v571_v11 = vpop.xlane.xlu1 %570 }
 0x25b   : > { %924 = vpow2.f32 %v628_v9  ;;  %v1164_v12 = vsub.f32 %v1095_v26, %v571_v11  ;;  %v565_v13 = vpop.xlane.xlu0 %564 }
 0x25c   : > { %v1167_v14 = vsub.f32 %v1099_v29, %v565_v13  ;;  %926 = vpow2.f32 %v624_v10 }
 0x25d   : > { %v630_v15 = vmul.f32 1.442695, %v1164_v12 }
 0x25e   : > { %v626_v16 = vmul.f32 1.442695, %v1167_v14 }
 0x25f   : > { %928 = vpow2.f32 %v630_v15  ;;  %v580_v17 = vpop.xlane.xlu0 %579 }
 0x260   : > { %v1172_v18 = vsub.f32 %v1107_v34, %v580_v17  ;;  %v583_v19 = vpop.xlane.xlu1 %582  ;;  %930 = vpow2.f32 %v626_v16 }
 0x261   : > { %v1175_v20 = vsub.f32 %v1109_v37, %v583_v19 }
 0x262   : > { %v636_v21 = vmul.f32 1.442695, %v1172_v18 }
 0x263   : > { %v638_v22 = vmul.f32 1.442695, %v1175_v20  ;;  %v574_v23 = vpop.xlane.xlu0 %573 }
 0x264   : > { %932 = vpow2.f32 %v636_v21  ;;  %v1180_v24 = vsub.f32 %v1113_v40, %v574_v23  ;;  %v577_v25 = vpop.xlane.xlu1 %576 }
 0x265   : > { %v925_v26 = vpop.eup %924  ;;  %934 = vpow2.f32 %v638_v22  ;;  %v1183_v27 = vsub.f32 %v1115_v41, %v577_v25 }
 0x266   : > { %v632_v28 = vmul.f32 1.442695, %v1180_v24  ;;  %v662_v29 = vsel %vm559_vm2, %v925_v26, 0.0  ;;  %v927_v30 = vpop.eup %926 }
 0x267   : > { %v634_v31 = vmul.f32 1.442695, %v1183_v27  ;;  %663 = vadd.xlane.f32.xlu0 %v662_v29  ;;  %v592_v32 = vpop.xlane.xlu0 %591  ;;  %v656_v39 = vsel %vm559_vm2, %v927_v30, 0.0 }
 0x268   : > { %936 = vpow2.f32 %v632_v28  ;;  %v1189_v33 = vsub.f32 %v1121_v45, %v592_v32  ;;  %v595_v34 = vpop.xlane.xlu1 %594 }
 0x269   : > { %v929_v35 = vpop.eup %928  ;;  %938 = vpow2.f32 %v634_v31  ;;  %v1192_v36 = vsub.f32 %v1125_v49, %v595_v34 }
 0x26a   : > { %v644_v37 = vmul.f32 1.442695, %v1189_v33  ;;  %v665_v38 = vsel %vm559_vm2, %v929_v35, 0.0  ;;  %v931_v40 = vpop.eup %930 }
 0x26b   : > { %v646_v41 = vmul.f32 1.442695, %v1192_v36  ;;  %666 = vadd.xlane.f32.xlu1 %v665_v38  ;;  %657 = vadd.xlane.f32.xlu0 %v656_v39  ;;  %v586_v42 = vpop.xlane.xlu0 %585  ;;  %v659_v48 = vsel %vm559_vm2, %v931_v40, 0.0 }
 0x26c   : > { %940 = vpow2.f32 %v644_v37  ;;  %v1199_v43 = vsub.f32 %v1129_v52, %v586_v42  ;;  %v589_v44 = vpop.xlane.xlu1 %588 }
 0x26d   : > { %942 = vpow2.f32 %v646_v41  ;;  %v1202_v45 = vsub.f32 %v1131_v53, %v589_v44 }
 0x26e   : > { %v933_v46 = vpop.eup %932  ;;  %v640_v47 = vmul.f32 1.442695, %v1199_v43 }
 0x26f   : > { %v935_v49 = vpop.eup %934  ;;  %v642_v50 = vmul.f32 1.442695, %v1202_v45  ;;  %660 = vadd.xlane.f32.xlu1 %v659_v48  ;;  %v598_v51 = vpop.xlane.xlu0 %597  ;;  %v674_v54 = vsel %vm559_vm2, %v933_v46, 0.0 }
 0x270   : > { %944 = vpow2.f32 %v640_v47  ;;  %v1209_v52 = vsub.f32 %v1139_v59, %v598_v51  ;;  %675 = vadd.xlane.f32.xlu0 %v674_v54  ;;  %v677_v58 = vsel %vm559_vm2, %v935_v49, 0.0 }
 0x271   : > { %946 = vpow2.f32 %v642_v50  ;;  %v601_v53 = vpop.xlane.xlu1 %600 }
 0x272   : > { %v937_v55 = vpop.eup %936  ;;  %v648_v56 = vmul.f32 1.442695, %v1209_v52  ;;  %v1213_v57 = vsub.f32 %v1143_v63, %v601_v53 }
 0x273   : > { %v939_v60 = vpop.eup %938  ;;  %678 = vadd.xlane.f32.xlu1 %v677_v58  ;;  %v604_v61 = vpop.xlane.xlu0 %603  ;;  %v668_v0 = vsel %vm559_vm2, %v937_v55, 0.0 }
 0x274   : > { %948 = vpow2.f32 %v648_v56  ;;  %v650_v59 = vmul.f32 1.442695, %v1213_v57  ;;  %v1219_v2 = vsub.f32 %v1141_v62, %v604_v61  ;;  %669 = vadd.xlane.f32.xlu0 %v668_v0  ;;  %v671_v7 = vsel %vm559_vm2, %v939_v60, 0.0 }
 0x275   : > { %v607_v3 = vpop.xlane.xlu1 %606 }
 0x276   : > { %v941_v4 = vpop.eup %940  ;;  %950 = vpow2.f32 %v650_v59  ;;  %v652_v63 = vmul.f32 1.442695, %v1219_v2  ;;  %v1223_v5 = vsub.f32 %v1147_v1, %v607_v3 }
 0x277   : > { %v943_v9 = vpop.eup %942  ;;  %672 = vadd.xlane.f32.xlu1 %v671_v7  ;;  %v686_v10 = vsel %vm559_vm2, %v941_v4, 0.0 }
 0x278   : > { %952 = vpow2.f32 %v652_v63  ;;  %v654_v11 = vmul.f32 1.442695, %v1223_v5  ;;  %687 = vadd.xlane.f32.xlu0 %v686_v10  ;;  %v689_v13 = vsel %vm559_vm2, %v943_v9, 0.0 }
 0x27a   : > { %v945_v62 = vpop.eup %944  ;;  %954 = vpow2.f32 %v654_v11 }
 0x27b   : > { %v947_v15 = vpop.eup %946  ;;  %690 = vadd.xlane.f32.xlu1 %v689_v13  ;;  %v680_v16 = vsel %vm559_vm2, %v945_v62, 0.0 }
 0x27c   : > { %681 = vadd.xlane.f32.xlu0 %v680_v16  ;;  %v683_v17 = vsel %vm559_vm2, %v947_v15, 0.0 }
 0x27e   : > { %v949_v1 = vpop.eup %948 }
 0x27f   : > { %684 = vadd.xlane.f32.xlu1 %v683_v17  ;;  %v692_v19 = vsel %vm559_vm2, %v949_v1, 0.0 }
 0x280   : > { %v951_v21 = vpop.eup %950  ;;  %693 = vadd.xlane.f32.xlu0 %v692_v19 }
 0x281   : > { %v695_v22 = vsel %vm559_vm2, %v951_v21, 0.0 }
 0x282   : > { %v953_v23 = vpop.eup %952 }
 0x283   : > { %696 = vadd.xlane.f32.xlu1 %v695_v22  ;;  %v698_v25 = vsel %vm559_vm2, %v953_v23, 0.0 }
 0x284   : > { %v955_v26 = vpop.eup %954  ;;  %699 = vadd.xlane.f32.xlu0 %v698_v25 }
 0x285   : > { %v701_v28 = vsel %vm559_vm2, %v955_v26, 0.0 }
 0x287   : > { %702 = vadd.xlane.f32.xlu1 %v701_v28 }
 0x2f4   : > { %v664_v29 = vpop.xlane.xlu0 %663 }
 0x2f5   : > { %956 = vlog2.f32 %v664_v29 }
 0x2f8   : > { %v667_v30 = vpop.xlane.xlu1 %666  ;;  %v658_v31 = vpop.xlane.xlu0 %657 }
 0x2f9   : > { %958 = vlog2.f32 %v667_v30 }
 0x2fa   : > { %960 = vlog2.f32 %v658_v31 }
 0x2fc   : > { %v661_v32 = vpop.xlane.xlu1 %660 }
 0x2fd   : > { %962 = vlog2.f32 %v661_v32  ;;  %v676_v34 = vpop.xlane.xlu0 %675 }
 0x2fe   : > { %964 = vlog2.f32 %v676_v34 }
 0x2ff   : > { %v957_v35 = vpop.eup %956 }
 0x300   : > { %v709_v37 = vmul.f32 0.6931472, %v957_v35  ;;  %v679_v38 = vpop.xlane.xlu1 %678 }
 0x301   : > { %966 = vlog2.f32 %v679_v38  ;;  %v670_v39 = vpop.xlane.xlu0 %669 }
 0x302   : > { %v738_v40 = vsub.f32 %v1156_v6, %v709_v37  ;;  %968 = vlog2.f32 %v670_v39 }
 0x303   : > { %v959_v41 = vpop.eup %958 }
 0x304   : > { %v961_v42 = vpop.eup %960  ;;  %754 = vst.msk [vmem:[%s1240_s12 + $0x10] sm:$0xff] %vm559_vm2, %v738_v40  ;;  %v711_v44 = vmul.f32 0.6931472, %v959_v41  ;;  %v673_v46 = vpop.xlane.xlu1 %672 }
 0x305   : > { %v705_v47 = vmul.f32 0.6931472, %v961_v42  ;;  %970 = vlog2.f32 %v673_v46  ;;  %v688_v48 = vpop.xlane.xlu0 %687 }
 0x306   : > { %v739_v49 = vsub.f32 %v1164_v12, %v711_v44  ;;  %972 = vlog2.f32 %v688_v48 }
 0x307   : > { %v963_v50 = vpop.eup %962  ;;  %v736_v51 = vsub.f32 %v1159_v8, %v705_v47 }
 0x308   : > { %v965_v54 = vpop.eup %964  ;;  %755 = vst.msk [vmem:[%s1240_s12 + $0x18] sm:$0xff] %vm559_vm2, %v739_v49  ;;  %v707_v6 = vmul.f32 0.6931472, %v963_v50  ;;  %v691_v53 = vpop.xlane.xlu1 %690 }
 0x309   : > { %752 = vst.msk [vmem:[%s1240_s12] sm:$0xff] %vm559_vm2, %v736_v51  ;;  %v717_v55 = vmul.f32 0.6931472, %v965_v54  ;;  %974 = vlog2.f32 %v691_v53  ;;  %v682_v56 = vpop.xlane.xlu0 %681 }
 0x30a   : > { %v737_v58 = vsub.f32 %v1167_v14, %v707_v6  ;;  %976 = vlog2.f32 %v682_v56 }
 0x30b   : > { %v967_v12 = vpop.eup %966  ;;  %v742_v60 = vsub.f32 %v1172_v18, %v717_v55 }
 0x30c   : > { %v969_v61 = vpop.eup %968  ;;  %753 = vst.msk [vmem:[%s1240_s12 + $0x8] sm:$0xff] %vm559_vm2, %v737_v58  ;;  %v719_v8 = vmul.f32 0.6931472, %v967_v12  ;;  %v685_v0 = vpop.xlane.xlu1 %684 }
 0x30d   : > { %758 = vst.msk [vmem:[%s1240_s12 + $0x30] sm:$0xff] %vm559_vm2, %v742_v60  ;;  %v713_v59 = vmul.f32 0.6931472, %v969_v61  ;;  %978 = vlog2.f32 %v685_v0  ;;  %v694_v3 = vpop.xlane.xlu0 %693 }
 0x30e   : > { %v743_v4 = vsub.f32 %v1175_v20, %v719_v8  ;;  %980 = vlog2.f32 %v694_v3 }
 0x30f   : > { %v971_v14 = vpop.eup %970  ;;  %v740_v63 = vsub.f32 %v1180_v24, %v713_v59 }
 0x310   : > { %v973_v7 = vpop.eup %972  ;;  %759 = vst.msk [vmem:[%s1240_s12 + $0x38] sm:$0xff] %vm559_vm2, %v743_v4  ;;  %v715_v18 = vmul.f32 0.6931472, %v971_v14  ;;  %v697_v9 = vpop.xlane.xlu1 %696 }
 0x311   : > { %756 = vst.msk [vmem:[%s1240_s12 + $0x20] sm:$0xff] %vm559_vm2, %v740_v63  ;;  %v725_v10 = vmul.f32 0.6931472, %v973_v7  ;;  %982 = vlog2.f32 %v697_v9  ;;  %v700_v11 = vpop.xlane.xlu0 %699 }
 0x312   : > { %v741_v62 = vsub.f32 %v1183_v27, %v715_v18  ;;  %984 = vlog2.f32 %v700_v11 }
 0x313   : > { %v975_v20 = vpop.eup %974  ;;  %v746_v13 = vsub.f32 %v1189_v33, %v725_v10 }
 0x314   : > { %v977_v24 = vpop.eup %976  ;;  %757 = vst.msk [vmem:[%s1240_s12 + $0x28] sm:$0xff] %vm559_vm2, %v741_v62  ;;  %v727_v15 = vmul.f32 0.6931472, %v975_v20  ;;  %v703_v16 = vpop.xlane.xlu1 %702 }
 0x315   : > { %762 = vst.msk [vmem:[%s1240_s12 + $0x50] sm:$0xff] %vm559_vm2, %v746_v13  ;;  %v721_v1 = vmul.f32 0.6931472, %v977_v24  ;;  %986 = vlog2.f32 %v703_v16 }
 0x316   : > { %v747_v17 = vsub.f32 %v1192_v36, %v727_v15 }
 0x317   : > { %v979_v19 = vpop.eup %978  ;;  %v744_v27 = vsub.f32 %v1199_v43, %v721_v1 }
 0x318   : > { %v981_v21 = vpop.eup %980  ;;  %763 = vst.msk [vmem:[%s1240_s12 + $0x58] sm:$0xff] %vm559_vm2, %v747_v17  ;;  %v723_v33 = vmul.f32 0.6931472, %v979_v19 }
 0x319   : > { %760 = vst.msk [vmem:[%s1240_s12 + $0x40] sm:$0xff] %vm559_vm2, %v744_v27  ;;  %v729_v22 = vmul.f32 0.6931472, %v981_v21 }
 0x31a   : > { %v745_v23 = vsub.f32 %v1202_v45, %v723_v33 }
 0x31b   : > { %v983_v25 = vpop.eup %982  ;;  %v748_v26 = vsub.f32 %v1209_v52, %v729_v22 }
 0x31c   : > { %v985_v28 = vpop.eup %984  ;;  %761 = vst.msk [vmem:[%s1240_s12 + $0x48] sm:$0xff] %vm559_vm2, %v745_v23  ;;  %v731_v36 = vmul.f32 0.6931472, %v983_v25 }
 0x31d   : > { %764 = vst.msk [vmem:[%s1240_s12 + $0x60] sm:$0xff] %vm559_vm2, %v748_v26  ;;  %v733_v43 = vmul.f32 0.6931472, %v985_v28 }
 0x31e   : > { %v749_v29 = vsub.f32 %v1213_v57, %v731_v36 }
 0x31f   : > { %v987_v30 = vpop.eup %986  ;;  %v750_v31 = vsub.f32 %v1219_v2, %v733_v43 }
 0x320   : > { %765 = vst.msk [vmem:[%s1240_s12 + $0x68] sm:$0xff] %vm559_vm2, %v749_v29  ;;  %v735_v32 = vmul.f32 0.6931472, %v987_v30 }
 0x321   : > { %766 = vst.msk [vmem:[%s1240_s12 + $0x70] sm:$0xff] %vm559_vm2, %v750_v31 }
 0x322   : > { %v751_v45 = vsub.f32 %v1223_v5, %v735_v32 }
 0x324   : > { %767 = vst.msk [vmem:[%s1240_s12 + $0x78] sm:$0xff] %vm559_vm2, %v751_v45 }
 0x325 PF: > { %s15_s18 = sadd.s32 1, %s994_s18  }
 0x326   : > { %p12_p4 = scmp.ge.s32.totalorder %s15_s18, 4  }
 0x328   :  { %14 = sbr.rel (!%p12_p4) target bundleno = 1 (0x1), region = 70 }

</bundles_post_ra>
